<compile_context>
chip_gen: v7x
topology: tpu7x:2x2x1
jax: 0.10.0
libtpu: 0.0.40
codegen_flags: <defaults>
</compile_context>

<pallas_src>
import jax
import jax.numpy as jnp
from jax.experimental import pallas as pl
from jax.experimental.pallas import tpu as pltpu

LANE = 128  # TPU lane width; padded feature dims are multiples of this.


def _round_up(n, m):
    return ((n + m - 1) // m) * m


def _cdiv(a, b):
    return -(-a // b)


def vae_kernel(
    x_ref,            # [TB, D]               input dtype (f32/bf16), unpadded features
    eps_ref,          # [TB, L_pad]           f32 reparameterization noise
    w1_ref, b1_ref,   # [D, H_pad] bf16,      [1, H_pad] f32       encoder layer 1
    w2_ref, b2_ref,   # [H_pad, 2*L_pad] bf16,[1, 2*L_pad] f32     fused mean|logvar head
    w3_ref, b3_ref,   # [L_pad, H_pad] bf16,  [1, H_pad] f32       decoder layer 1
    w4_ref, b4_ref,   # [H_pad, D_pad] bf16,  [1, D_pad] f32       decoder layer 2
    recon_ref,        # [TB, D_pad]  bf16
    mean_ref,         # [TB, L_pad]  f32
    logvar_ref,       # [TB, L_pad]  f32
):
    l_pad = mean_ref.shape[1]

    # ---- encoder ----
    x = x_ref[...].astype(w1_ref.dtype)                          # in-register bf16 cast
    h = jnp.dot(x, w1_ref[...], preferred_element_type=jnp.float32)
    h = jnp.maximum(h + b1_ref[...], 0.0)                        # f32 ReLU on the VPU

    # fused encoder head: one [H_pad, 2*L_pad] MXU pass instead of two narrow ones
    head = jnp.dot(h.astype(w2_ref.dtype), w2_ref[...],
                   preferred_element_type=jnp.float32) + b2_ref[...]
    mean = head[:, :l_pad]                                        # 128-aligned lane slices
    logvar = head[:, l_pad:]

    # ---- reparameterize (f32 vector path) ----
    std = jnp.exp(0.5 * logvar)
    z = mean + eps_ref[...] * std                                 # padded lanes killed by w3 zero rows

    # ---- decoder ----
    h2 = jnp.dot(z.astype(w3_ref.dtype), w3_ref[...],
                 preferred_element_type=jnp.float32)
    h2 = jnp.maximum(h2 + b3_ref[...], 0.0)
    recon = jnp.dot(h2.astype(w4_ref.dtype), w4_ref[...],
                    preferred_element_type=jnp.float32) + b4_ref[...]

    # ---- lane-dense writebacks (all last dims are 128-multiples) ----
    recon_ref[...] = recon.astype(recon_ref.dtype)
    mean_ref[...] = mean
    logvar_ref[...] = logvar


def _pick_tile(B, block_b):
    """Batch tile that minimises tail padding and keeps >=2 grid steps on big batches."""
    n_blocks = max(1, _cdiv(B, block_b))
    if n_blocks == 1 and B > 256:
        n_blocks = 2                       # give both v7x TensorCores work
    TB = _round_up(_cdiv(B, n_blocks), 8)  # sublane-aligned, minimal-tail tile
    return TB, _cdiv(B, TB)


def _vmem_limit_bytes(TB, D, Dp, Hp, Lp):
    io = 2 * TB * (D * 4 + Lp * 4 + Dp * 2 + 2 * Lp * 4)              # double-buffered x/eps/outs
    wts = 2 * (D * Hp + Hp * 2 * Lp + Lp * Hp + Hp * Dp) \
        + 4 * (2 * Hp + 2 * Lp + Dp)                                   # single-buffered weights+biases
    interm = 4 * TB * (Hp + 2 * Lp + Lp + Hp + Dp)                     # f32 h/head/z/h2/recon
    budget = io + wts + 2 * interm + (8 << 20)                         # 2x headroom + slack
    return min(max(budget, 32 << 20), 64 << 20)                        # valid on v7x's 64 MiB VMEM


def vae_forward(x, eps, padded_params, *, latent_dim, block_b=512):
    """VAE forward. x: [B, D] (unpadded), eps: [B, L_pad] f32 (preferred) or [B, L].

    Returns (reconstructed [B, D] bf16, mean [B, L] f32, logvar [B, L] f32).
    """
    B, D = x.shape
    w1, b1, w2, b2, w3, b3, w4, b4 = padded_params
    Hp = w1.shape[1]
    Lp = w3.shape[0]
    Dp = w4.shape[1]

    # Fallback only: prefer generating eps directly at width L_pad upstream.
    if eps.shape[1] != Lp:
        eps = jnp.pad(eps, ((0, 0), (0, Lp - eps.shape[1])))

    TB, n_blocks = _pick_tile(B, block_b)
    B_pad = TB * n_blocks
    if B_pad != B:  # tail-only batch pad (no-op when B divides evenly)
        x = jnp.pad(x, ((0, B_pad - B), (0, 0)))
        eps = jnp.pad(eps, ((0, B_pad - B), (0, 0)))

    batch_spec = lambda w: pl.BlockSpec((TB, w), lambda i: (i, 0))
    # Constant index_map -> weights stay VMEM-resident; single-buffer them.
    resident = lambda a: pl.BlockSpec(a.shape, lambda i: (0, 0),
                                      pipeline_mode=pl.Buffered(1))

    recon_p, mean_p, logvar_p = pl.pallas_call(
        vae_kernel,
        grid=(n_blocks,),
        in_specs=[
            batch_spec(D), batch_spec(Lp),
            resident(w1), resident(b1),
            resident(w2), resident(b2),
            resident(w3), resident(b3),
            resident(w4), resident(b4),
        ],
        out_specs=(batch_spec(Dp), batch_spec(Lp), batch_spec(Lp)),
        out_shape=(
            jax.ShapeDtypeStruct((B_pad, Dp), jnp.bfloat16),
            jax.ShapeDtypeStruct((B_pad, Lp), jnp.float32),
            jax.ShapeDtypeStruct((B_pad, Lp), jnp.float32),
        ),
        compiler_params=pltpu.CompilerParams(
            dimension_semantics=("parallel",),
            vmem_limit_bytes=_vmem_limit_bytes(TB, D, Dp, Hp, Lp),
        ),
    )(x, eps, w1, b1, w2, b2, w3, b3, w4, b4)

    return (recon_p[:B, :D], mean_p[:B, :latent_dim], logvar_p[:B, :latent_dim])


def init_vae_params(key, input_dim, hidden_dim, latent_dim):
    """nn.Linear-default init (uniform +/- 1/sqrt(fan_in)); weights stored [in, out]."""
    ks = jax.random.split(key, 8)

    def linear(kw, kb, fan_in, fan_out):
        bound = 1.0 / float(fan_in) ** 0.5
        w = jax.random.uniform(kw, (fan_in, fan_out), jnp.float32, -bound, bound)
        b = jax.random.uniform(kb, (1, fan_out), jnp.float32, -bound, bound)
        return w, b

    w1, b1 = linear(ks[0], ks[1], input_dim, hidden_dim)
    w2, b2 = linear(ks[2], ks[3], hidden_dim, 2 * latent_dim)   # fused mean|logvar head
    w3, b3 = linear(ks[4], ks[5], latent_dim, hidden_dim)
    w4, b4 = linear(ks[6], ks[7], hidden_dim, input_dim)
    return (w1, b1, w2, b2, w3, b3, w4, b4)


def pad_vae_params(params, input_dim, hidden_dim, latent_dim):
    """One-time weight padding to lane multiples + bf16 cast for the MXU operands.

    w1 keeps its true input rows (so x needs no feature padding).  The fused encoder
    head keeps torch.chunk(dim=1) semantics: mean occupies cols [0, L) and logvar
    cols [L_pad, L_pad+L) so each half sits in its own 128-aligned lane region.
    INVARIANT: rows [L, L_pad) of w3 must be zero (see module docstring).
    """
    w1, b1, w2, b2, w3, b3, w4, b4 = params
    D, H, L = input_dim, hidden_dim, latent_dim
    Dp, Hp, Lp = _round_up(D, LANE), _round_up(H, LANE), _round_up(L, LANE)

    def pad_w(w, rows, cols):
        return jnp.zeros((rows, cols), jnp.float32).at[:w.shape[0], :w.shape[1]].set(w)

    def pad_b(b, cols):
        return jnp.zeros((1, cols), jnp.float32).at[:, :b.shape[1]].set(b)

    w1p = pad_w(w1, D, Hp).astype(jnp.bfloat16)      # rows unpadded: x streams in as-is
    b1p = pad_b(b1, Hp)

    w2p = jnp.zeros((Hp, 2 * Lp), jnp.float32)
    w2p = w2p.at[:H, :L].set(w2[:, :L])              # mean half   -> cols [0, L)
    w2p = w2p.at[:H, Lp:Lp + L].set(w2[:, L:])       # logvar half -> cols [Lp, Lp+L)
    w2p = w2p.astype(jnp.bfloat16)
    b2p = jnp.zeros((1, 2 * Lp), jnp.float32)
    b2p = b2p.at[:, :L].set(b2[:, :L]).at[:, Lp:Lp + L].set(b2[:, L:])

    w3p = pad_w(w3, Lp, Hp).astype(jnp.bfloat16)     # padded rows stay zero (invariant)
    b3p = pad_b(b3, Hp)
    w4p = pad_w(w4, Hp, Dp).astype(jnp.bfloat16)
    b4p = pad_b(b4, Dp)
    # TODO(synk): on v7x the weights could be stored fp8 for large-H VAEs.
    return (w1p, b1p, w2p, b2p, w3p, b3p, w4p, b4p)


if __name__ == "__main__":
    B, INPUT_DIM, HIDDEN_DIM, LATENT_DIM = 8, 32, 64, 16
    L_PAD = _round_up(LATENT_DIM, LANE)

    key = jax.random.PRNGKey(0)
    k_x, k_eps, k_params = jax.random.split(key, 3)

    x = jax.random.normal(k_x, (B, INPUT_DIM), jnp.float32)
    # Reparameterization noise (torch.randn_like equivalent), generated directly at the
    # padded lane width so the forward pass needs no per-call pad/scatter pass.
    eps = jax.random.normal(k_eps, (B, L_PAD), jnp.float32)

    params = init_vae_params(k_params, INPUT_DIM, HIDDEN_DIM, LATENT_DIM)
    padded = pad_vae_params(params, INPUT_DIM, HIDDEN_DIM, LATENT_DIM)

    fwd = jax.jit(vae_forward, static_argnames=("latent_dim", "block_b"))
    recon, mean, logvar = fwd(x, eps, padded, latent_dim=LATENT_DIM)
    jax.block_until_ready((recon, mean, logvar))

    # Pure-JAX reference with the same bf16-operand / f32-accumulate matmul contract.
    w1, b1, w2, b2, w3, b3, w4, b4 = params
    bf = jnp.bfloat16
    dot = lambda a, w: jnp.dot(a.astype(bf), w.astype(bf),
                               preferred_element_type=jnp.float32)
    h = jnp.maximum(dot(x, w1) + b1, 0.0)
    head = dot(h, w2) + b2
    mean_r, logvar_r = head[:, :LATENT_DIM], head[:, LATENT_DIM:]
    z_r = mean_r + eps[:, :LATENT_DIM] * jnp.exp(0.5 * logvar_r)
    h2 = jnp.maximum(dot(z_r, w3) + b3, 0.0)
    recon_r = dot(h2, w4) + b4

    assert recon.shape == (B, INPUT_DIM) and recon.dtype == jnp.bfloat16
    assert mean.shape == (B, LATENT_DIM) and logvar.shape == (B, LATENT_DIM)
    assert jnp.allclose(mean, mean_r, atol=2e-3, rtol=2e-3)
    assert jnp.allclose(logvar, logvar_r, atol=2e-3, rtol=2e-3)
    # recon is stored bf16 by the kernel -> compare with bf16 round-trip tolerance.
    assert jnp.allclose(recon.astype(jnp.float32), recon_r, atol=2e-2, rtol=2e-2)

    print("KERNEL_OK")
</pallas_src>

<mosaic_0001>
module attributes {stable_mosaic.version = 11 : i64} {
  func.func @vae_kernel(%arg0: i32, %arg1: memref<8x32xf32, #tpu.memory_space<vmem>>, %arg2: memref<8x128xf32, #tpu.memory_space<vmem>>, %arg3: memref<32x128xbf16, #tpu.memory_space<vmem>>, %arg4: memref<1x128xf32, #tpu.memory_space<vmem>>, %arg5: memref<128x256xbf16, #tpu.memory_space<vmem>>, %arg6: memref<1x256xf32, #tpu.memory_space<vmem>>, %arg7: memref<128x128xbf16, #tpu.memory_space<vmem>>, %arg8: memref<1x128xf32, #tpu.memory_space<vmem>>, %arg9: memref<128x128xbf16, #tpu.memory_space<vmem>>, %arg10: memref<1x128xf32, #tpu.memory_space<vmem>>, %arg11: memref<8x128xbf16, #tpu.memory_space<vmem>>, %arg12: memref<8x128xf32, #tpu.memory_space<vmem>>, %arg13: memref<8x128xf32, #tpu.memory_space<vmem>>) attributes {dimension_semantics = [#tpu.dimension_semantics<parallel>], iteration_bounds = array<i64: 1>, scalar_prefetch = 0 : i64, scratch_operands = 0 : i64, tpu.core_type = #tpu.core_type<tc>, window_params = [{transform_indices = @transform_0, window_bounds = array<i64: 8, 32>}, {transform_indices = @transform_1, window_bounds = array<i64: 8, 128>}, {pipeline_mode = #tpu.pipeline_mode<synchronous>, transform_indices = @transform_2, window_bounds = array<i64: 32, 128>}, {pipeline_mode = #tpu.pipeline_mode<synchronous>, transform_indices = @transform_3, window_bounds = array<i64: 1, 128>}, {pipeline_mode = #tpu.pipeline_mode<synchronous>, transform_indices = @transform_4, window_bounds = array<i64: 128, 256>}, {pipeline_mode = #tpu.pipeline_mode<synchronous>, transform_indices = @transform_5, window_bounds = array<i64: 1, 256>}, {pipeline_mode = #tpu.pipeline_mode<synchronous>, transform_indices = @transform_6, window_bounds = array<i64: 128, 128>}, {pipeline_mode = #tpu.pipeline_mode<synchronous>, transform_indices = @transform_7, window_bounds = array<i64: 1, 128>}, {pipeline_mode = #tpu.pipeline_mode<synchronous>, transform_indices = @transform_8, window_bounds = array<i64: 128, 128>}, {pipeline_mode = #tpu.pipeline_mode<synchronous>, transform_indices = @transform_9, window_bounds = array<i64: 1, 128>}, {transform_indices = @transform_10, window_bounds = array<i64: 8, 128>}, {transform_indices = @transform_11, window_bounds = array<i64: 8, 128>}, {transform_indices = @transform_12, window_bounds = array<i64: 8, 128>}]} {
    %c0 = arith.constant 0 : index
    %c0_0 = arith.constant 0 : index
    %0 = vector.load %arg1[%c0, %c0_0] : memref<8x32xf32, #tpu.memory_space<vmem>>, vector<8x32xf32>
    %1 = arith.truncf %0 : vector<8x32xf32> to vector<8x32xbf16>
    %c0_1 = arith.constant 0 : index
    %c0_2 = arith.constant 0 : index
    %2 = vector.load %arg3[%c0_1, %c0_2] : memref<32x128xbf16, #tpu.memory_space<vmem>>, vector<32x128xbf16>
    %cst = arith.constant dense<0.000000e+00> : vector<8x128xf32>
    %3 = tpu.matmul %1, %2, %cst {dimension_numbers = #tpu.dot_dimension_numbers<[1], [0], [0], [1], [0, 0, 1, 1], [], []>} : vector<8x32xbf16>, vector<32x128xbf16>, vector<8x128xf32> -> vector<8x128xf32>
    %c0_3 = arith.constant 0 : index
    %c0_4 = arith.constant 0 : index
    %4 = vector.load %arg4[%c0_3, %c0_4] : memref<1x128xf32, #tpu.memory_space<vmem>>, vector<1x128xf32>
    %5 = vector.broadcast %4 : vector<1x128xf32> to vector<8x128xf32>
    %6 = arith.addf %3, %5 : vector<8x128xf32>
    %cst_5 = arith.constant 0.000000e+00 : f32
    %7 = vector.broadcast %cst_5 : f32 to vector<8x128xf32>
    %8 = arith.maximumf %6, %7 : vector<8x128xf32>
    %9 = arith.truncf %8 : vector<8x128xf32> to vector<8x128xbf16>
    %c0_6 = arith.constant 0 : index
    %c0_7 = arith.constant 0 : index
    %10 = vector.load %arg5[%c0_6, %c0_7] : memref<128x256xbf16, #tpu.memory_space<vmem>>, vector<128x256xbf16>
    %cst_8 = arith.constant dense<0.000000e+00> : vector<8x256xf32>
    %11 = tpu.matmul %9, %10, %cst_8 {dimension_numbers = #tpu.dot_dimension_numbers<[1], [0], [0], [1], [0, 0, 1, 1], [], []>} : vector<8x128xbf16>, vector<128x256xbf16>, vector<8x256xf32> -> vector<8x256xf32>
    %c0_9 = arith.constant 0 : index
    %c0_10 = arith.constant 0 : index
    %12 = vector.load %arg6[%c0_9, %c0_10] : memref<1x256xf32, #tpu.memory_space<vmem>>, vector<1x256xf32>
    %13 = vector.broadcast %12 : vector<1x256xf32> to vector<8x256xf32>
    %14 = arith.addf %11, %13 : vector<8x256xf32>
    %15 = vector.extract_strided_slice %14 {offsets = [0, 0], sizes = [8, 128], strides = [1, 1]} : vector<8x256xf32> to vector<8x128xf32>
    %16 = vector.extract_strided_slice %14 {offsets = [0, 128], sizes = [8, 128], strides = [1, 1]} : vector<8x256xf32> to vector<8x128xf32>
    %cst_11 = arith.constant 5.000000e-01 : f32
    %17 = vector.broadcast %cst_11 : f32 to vector<8x128xf32>
    %18 = arith.mulf %17, %16 : vector<8x128xf32>
    %19 = math.exp %18 : vector<8x128xf32>
    %c0_12 = arith.constant 0 : index
    %c0_13 = arith.constant 0 : index
    %20 = vector.load %arg2[%c0_12, %c0_13] : memref<8x128xf32, #tpu.memory_space<vmem>>, vector<8x128xf32>
    %21 = arith.mulf %20, %19 : vector<8x128xf32>
    %22 = arith.addf %15, %21 : vector<8x128xf32>
    %23 = arith.truncf %22 : vector<8x128xf32> to vector<8x128xbf16>
    %c0_14 = arith.constant 0 : index
    %c0_15 = arith.constant 0 : index
    %24 = vector.load %arg7[%c0_14, %c0_15] : memref<128x128xbf16, #tpu.memory_space<vmem>>, vector<128x128xbf16>
    %cst_16 = arith.constant dense<0.000000e+00> : vector<8x128xf32>
    %25 = tpu.matmul %23, %24, %cst_16 {dimension_numbers = #tpu.dot_dimension_numbers<[1], [0], [0], [1], [0, 0, 1, 1], [], []>} : vector<8x128xbf16>, vector<128x128xbf16>, vector<8x128xf32> -> vector<8x128xf32>
    %c0_17 = arith.constant 0 : index
    %c0_18 = arith.constant 0 : index
    %26 = vector.load %arg8[%c0_17, %c0_18] : memref<1x128xf32, #tpu.memory_space<vmem>>, vector<1x128xf32>
    %27 = vector.broadcast %26 : vector<1x128xf32> to vector<8x128xf32>
    %28 = arith.addf %25, %27 : vector<8x128xf32>
    %cst_19 = arith.constant 0.000000e+00 : f32
    %29 = vector.broadcast %cst_19 : f32 to vector<8x128xf32>
    %30 = arith.maximumf %28, %29 : vector<8x128xf32>
    %31 = arith.truncf %30 : vector<8x128xf32> to vector<8x128xbf16>
    %c0_20 = arith.constant 0 : index
    %c0_21 = arith.constant 0 : index
    %32 = vector.load %arg9[%c0_20, %c0_21] : memref<128x128xbf16, #tpu.memory_space<vmem>>, vector<128x128xbf16>
    %cst_22 = arith.constant dense<0.000000e+00> : vector<8x128xf32>
    %33 = tpu.matmul %31, %32, %cst_22 {dimension_numbers = #tpu.dot_dimension_numbers<[1], [0], [0], [1], [0, 0, 1, 1], [], []>} : vector<8x128xbf16>, vector<128x128xbf16>, vector<8x128xf32> -> vector<8x128xf32>
    %c0_23 = arith.constant 0 : index
    %c0_24 = arith.constant 0 : index
    %34 = vector.load %arg10[%c0_23, %c0_24] : memref<1x128xf32, #tpu.memory_space<vmem>>, vector<1x128xf32>
    %35 = vector.broadcast %34 : vector<1x128xf32> to vector<8x128xf32>
    %36 = arith.addf %33, %35 : vector<8x128xf32>
    %37 = arith.truncf %36 : vector<8x128xf32> to vector<8x128xbf16>
    %c0_25 = arith.constant 0 : index
    %c0_26 = arith.constant 0 : index
    %38 = vector.load %arg11[%c0_25, %c0_26] : memref<8x128xbf16, #tpu.memory_space<vmem>>, vector<8x128xbf16>
    tpu.vector_store %arg11[%c0_25, %c0_26], %37 {strides = array<i32>} : memref<8x128xbf16, #tpu.memory_space<vmem>>, vector<8x128xbf16>,
    %c0_27 = arith.constant 0 : index
    %c0_28 = arith.constant 0 : index
    %39 = vector.load %arg12[%c0_27, %c0_28] : memref<8x128xf32, #tpu.memory_space<vmem>>, vector<8x128xf32>
    tpu.vector_store %arg12[%c0_27, %c0_28], %15 {strides = array<i32>} : memref<8x128xf32, #tpu.memory_space<vmem>>, vector<8x128xf32>,
    %c0_29 = arith.constant 0 : index
    %c0_30 = arith.constant 0 : index
    %40 = vector.load %arg13[%c0_29, %c0_30] : memref<8x128xf32, #tpu.memory_space<vmem>>, vector<8x128xf32>
    tpu.vector_store %arg13[%c0_29, %c0_30], %16 {strides = array<i32>} : memref<8x128xf32, #tpu.memory_space<vmem>>, vector<8x128xf32>,
    return
  }
  func.func @transform_0(%arg0: i32) -> (i32, i32) {
    %c0_i32 = arith.constant 0 : i32
    %c0_i32_0 = arith.constant 0 : i32
    return %arg0, %c0_i32 : i32, i32
  }
  func.func @transform_1(%arg0: i32) -> (i32, i32) {
    %c0_i32 = arith.constant 0 : i32
    %c0_i32_0 = arith.constant 0 : i32
    return %arg0, %c0_i32 : i32, i32
  }
  func.func @transform_2(%arg0: i32) -> (i32, i32) {
    %c0_i32 = arith.constant 0 : i32
    %c0_i32_0 = arith.constant 0 : i32
    %c0_i32_1 = arith.constant 0 : i32
    return %c0_i32, %c0_i32_0 : i32, i32
  }
  func.func @transform_3(%arg0: i32) -> (i32, i32) {
    %c0_i32 = arith.constant 0 : i32
    %c0_i32_0 = arith.constant 0 : i32
    %c0_i32_1 = arith.constant 0 : i32
    return %c0_i32, %c0_i32_0 : i32, i32
  }
  func.func @transform_4(%arg0: i32) -> (i32, i32) {
    %c0_i32 = arith.constant 0 : i32
    %c0_i32_0 = arith.constant 0 : i32
    %c0_i32_1 = arith.constant 0 : i32
    return %c0_i32, %c0_i32_0 : i32, i32
  }
  func.func @transform_5(%arg0: i32) -> (i32, i32) {
    %c0_i32 = arith.constant 0 : i32
    %c0_i32_0 = arith.constant 0 : i32
    %c0_i32_1 = arith.constant 0 : i32
    return %c0_i32, %c0_i32_0 : i32, i32
  }
  func.func @transform_6(%arg0: i32) -> (i32, i32) {
    %c0_i32 = arith.constant 0 : i32
    %c0_i32_0 = arith.constant 0 : i32
    %c0_i32_1 = arith.constant 0 : i32
    return %c0_i32, %c0_i32_0 : i32, i32
  }
  func.func @transform_7(%arg0: i32) -> (i32, i32) {
    %c0_i32 = arith.constant 0 : i32
    %c0_i32_0 = arith.constant 0 : i32
    %c0_i32_1 = arith.constant 0 : i32
    return %c0_i32, %c0_i32_0 : i32, i32
  }
  func.func @transform_8(%arg0: i32) -> (i32, i32) {
    %c0_i32 = arith.constant 0 : i32
    %c0_i32_0 = arith.constant 0 : i32
    %c0_i32_1 = arith.constant 0 : i32
    return %c0_i32, %c0_i32_0 : i32, i32
  }
  func.func @transform_9(%arg0: i32) -> (i32, i32) {
    %c0_i32 = arith.constant 0 : i32
    %c0_i32_0 = arith.constant 0 : i32
    %c0_i32_1 = arith.constant 0 : i32
    return %c0_i32, %c0_i32_0 : i32, i32
  }
  func.func @transform_10(%arg0: i32) -> (i32, i32) {
    %c0_i32 = arith.constant 0 : i32
    %c0_i32_0 = arith.constant 0 : i32
    return %arg0, %c0_i32 : i32, i32
  }
  func.func @transform_11(%arg0: i32) -> (i32, i32) {
    %c0_i32 = arith.constant 0 : i32
    %c0_i32_0 = arith.constant 0 : i32
    return %arg0, %c0_i32 : i32, i32
  }
  func.func @transform_12(%arg0: i32) -> (i32, i32) {
    %c0_i32 = arith.constant 0 : i32
    %c0_i32_0 = arith.constant 0 : i32
    return %arg0, %c0_i32 : i32, i32
  }
}

</mosaic_0001>

<bundles_post_ra>
// kernel: vae_forward.1
= control target key start
LH: loop header
LB: loop body
LE: loop exit
PB: predicated region body
PF: predicated region fallthrough
CT: control target
= control target key end

     0   :  { %18 = vsyncpa [#allocation3], 0  ;;  %s1251_s0 = inlined_call_operand.hbm [shape: f32[8,32], index: 0, kind: input, shape index: {}]   ;;  %s1252_s1 = inlined_call_operand.hbm [shape: f32[8,128], index: 1, kind: input, shape index: {}]   ;;  %s1253_s2 = inlined_call_operand.hbm [shape: bf16[32,128], index: 2, kind: input, shape index: {}]   ;;  %s1254_s3 = inlined_call_operand.vmem [shape: f32[1,128], index: 3, kind: input, shape index: {}]   ;;  %s1255_s4 = inlined_call_operand.hbm [shape: bf16[128,256], index: 4, kind: input, shape index: {}]   ;;  %s1256_s5 = inlined_call_operand.vmem [shape: f32[1,256], index: 5, kind: input, shape index: {}]   ;;  %s1257_s6 = inlined_call_operand.hbm [shape: bf16[128,128], index: 6, kind: input, shape index: {}]   ;;  %s1258_s7 = inlined_call_operand.vmem [shape: f32[1,128], index: 7, kind: input, shape index: {}]   ;;  %s1259_s8 = inlined_call_operand.hbm [shape: bf16[128,128], index: 8, kind: input, shape index: {}]   ;;  %s1260_s9 = inlined_call_operand.vmem [shape: f32[1,128], index: 9, kind: input, shape index: {}]   ;;  %s1261_s10 = inlined_call_operand.hbm [shape: bf16[8,128], index: 10, kind: output, shape index: {0}]   ;;  %s1262_s11 = inlined_call_operand.hbm [shape: f32[8,128], index: 11, kind: output, shape index: {1}]   ;;  %s1263_s12 = inlined_call_operand.hbm [shape: f32[8,128], index: 12, kind: output, shape index: {2}]  }
   0x1   :  { %19 = vsyncpa [#allocation6], 0 }
   0x2   :  { %20 = vsyncpa [#allocation9], 0 }
   0x3   :  { %21 = vsyncpa [#allocation12], 0 }
   0x4   :  { %22 = vsyncpa [#allocation4], 0 }
   0x5   :  { %23 = vsyncpa [#allocation15], 0  ;;  %s996_s21 = smov [#allocation5]   ;;  %s997_s23 = smov [#allocation8]  }
   0x6   :  { %s40_s22 = sshll.u32 %s996_s21, 4  ;;  %s63_s24 = sshll.u32 %s997_s23, 4  ;;  %s41_s22 = int_to_ptr.vmem [resolvable:$true] %s40_s22  ;;  %s1077_s24 = int_to_ptr.vmem [resolvable:$true] %s63_s24 }
   0x7   :  { %s786_s27 = scalar_lea.hbm %s1252_s1, 128 }
   0x8   :  { %p787_p0 = scmp.ne.s32.totalorder %s1252_s1, %s786_s27  ;;  %p790_p1 = scmp.lt.u32.totalorder %s786_s27, %s1252_s1 }
   0xa   :  { %p792_p2 = pnand %p790_p1, %p787_p0 }
   0xc   :  { %795 = shalt.err (!%p792_p2)
}
   0xd   :  { %s796_s14 = scalar_lea.vmem %s41_s22, 128  ;;  %p801_p4 = scmp.lt.s32.totalorder %s41_s22, %s41_s22 }
   0xe   :  { %p797_p3 = scmp.ne.s32.totalorder %s41_s22, %s796_s14  ;;  %p802_p5 = scmp.lt.s32.totalorder %s796_s14, %s796_s14 }
  0x10   :  { %p803_p6 = por %p802_p5, %p801_p4 }
  0x12   :  { %p804_p7 = pnand %p803_p6, %p797_p3 }
  0x14   :  { %807 = shalt.err (!%p804_p7)
}
  0x15   :  { %43 = dma.hbm_to_vmem [thread:$0]  %s1252_s1, 128, %s41_s22, [#allocation6]  }
  0x16   :  { %s808_s19 = scalar_lea.hbm %s1255_s4, 2048 }
  0x17   :  { %p809_p8 = scmp.ne.s32.totalorder %s1255_s4, %s808_s19  ;;  %p812_p9 = scmp.lt.u32.totalorder %s808_s19, %s1255_s4 }
  0x19   :  { %p814_p10 = pnand %p812_p9, %p809_p8 }
  0x1b   :  { %817 = shalt.err (!%p814_p10)
}
  0x1c   :  { %s818_s26 = scalar_lea.vmem %s1077_s24, 2048  ;;  %p823_p12 = scmp.lt.s32.totalorder %s1077_s24, %s1077_s24 }
  0x1d   :  { %p819_p11 = scmp.ne.s32.totalorder %s1077_s24, %s818_s26  ;;  %p824_p13 = scmp.lt.s32.totalorder %s818_s26, %s818_s26 }
  0x1f   :  { %p825_p0 = por %p824_p13, %p823_p12 }
  0x21   :  { %p826_p1 = pnand %p825_p0, %p819_p11 }
  0x23   :  { %829 = shalt.err (!%p826_p1)
}
  0x24   :  { %s998_s1 = smov 128   ;;  %s999_s22 = smov 8  }
  0x25   :  { %69 = dma.hbm_to_vmem [thread:$0]  %s1255_s4, 2048, %s1077_s24, [#allocation9], %s998_s1, %s998_s1, %s999_s22  }
  0x26   :  { %s1000_s29 = smov [#allocation2]   ;;  %s1001_s13 = smov [#allocation7]  }
  0x27   :  { %s30_s30 = sshll.u32 %s1000_s29, 4  ;;  %s49_s14 = sshll.u32 %s1001_s13, 4  ;;  %s31_s30 = int_to_ptr.vmem [resolvable:$true] %s30_s30  ;;  %s1108_s14 = int_to_ptr.vmem [resolvable:$true] %s49_s14 }
  0x28   :  { %s830_s17 = scalar_lea.hbm %s1251_s0, 128 }
  0x29   :  { %p831_p2 = scmp.ne.s32.totalorder %s1251_s0, %s830_s17  ;;  %p834_p3 = scmp.lt.u32.totalorder %s830_s17, %s1251_s0 }
  0x2b   :  { %p836_p4 = pnand %p834_p3, %p831_p2 }
  0x2d   :  { %839 = shalt.err (!%p836_p4)
}
  0x2e   :  { %s840_s4 = scalar_lea.vmem %s31_s30, 128  ;;  %p845_p6 = scmp.lt.s32.totalorder %s31_s30, %s31_s30 }
  0x2f   :  { %p841_p5 = scmp.ne.s32.totalorder %s31_s30, %s840_s4  ;;  %p846_p7 = scmp.lt.s32.totalorder %s840_s4, %s840_s4 }
  0x31   :  { %p847_p8 = por %p846_p7, %p845_p6 }
  0x33   :  { %p848_p9 = pnand %p847_p8, %p841_p5 }
  0x35   :  { %851 = shalt.err (!%p848_p9)
}
  0x36   :  { %33 = dma.hbm_to_vmem [thread:$0]  %s1251_s0, 128, %s31_s30, [#allocation3]  }
  0x37   :  { %s852_s1 = scalar_lea.hbm %s1253_s2, 256 }
  0x38   :  { %p853_p10 = scmp.ne.s32.totalorder %s1253_s2, %s852_s1  ;;  %p856_p11 = scmp.lt.u32.totalorder %s852_s1, %s1253_s2 }
  0x3a   :  { %p858_p12 = pnand %p856_p11, %p853_p10 }
  0x3c   :  { %861 = shalt.err (!%p858_p12)
}
  0x3d   :  { %s862_s13 = scalar_lea.vmem %s1108_s14, 256  ;;  %p867_p0 = scmp.lt.s32.totalorder %s1108_s14, %s1108_s14 }
  0x3e   :  { %p863_p13 = scmp.ne.s32.totalorder %s1108_s14, %s862_s13  ;;  %p868_p1 = scmp.lt.s32.totalorder %s862_s13, %s862_s13 }
  0x40   :  { %p869_p2 = por %p868_p1, %p867_p0 }
  0x42   :  { %p870_p3 = pnand %p869_p2, %p863_p13 }
  0x44   :  { %873 = shalt.err (!%p870_p3)
}
  0x45   :  { %s1002_s0 = smov 64   ;;  %s1003_s30 = smov 4  }
  0x46   :  { %55 = dma.hbm_to_vmem [thread:$0]  %s1253_s2, 256, %s1108_s14, [#allocation6], %s1002_s0, %s1002_s0, %s1003_s30  }
  0x47   :  { %s1004_s17 = smov [#allocation10]   ;;  %s1005_s19 = smov [#allocation11]  }
  0x48   :  { %s77_s18 = sshll.u32 %s1004_s17, 4  ;;  %s91_s20 = sshll.u32 %s1005_s19, 4  ;;  %s78_s18 = int_to_ptr.vmem [resolvable:$true] %s77_s18  ;;  %s1142_s20 = int_to_ptr.vmem [resolvable:$true] %s91_s20 }
  0x49   :  { %s874_s24 = scalar_lea.hbm %s1257_s6, 1024 }
  0x4a   :  { %p875_p4 = scmp.ne.s32.totalorder %s1257_s6, %s874_s24  ;;  %p878_p5 = scmp.lt.u32.totalorder %s874_s24, %s1257_s6 }
  0x4c   :  { %p880_p6 = pnand %p878_p5, %p875_p4 }
  0x4e   :  { %883 = shalt.err (!%p880_p6)
}
  0x4f   :  { %s884_s2 = scalar_lea.vmem %s78_s18, 1024  ;;  %p889_p8 = scmp.lt.s32.totalorder %s78_s18, %s78_s18 }
  0x50   :  { %p885_p7 = scmp.ne.s32.totalorder %s78_s18, %s884_s2  ;;  %p890_p9 = scmp.lt.s32.totalorder %s884_s2, %s884_s2 }
  0x52   :  { %p891_p10 = por %p890_p9, %p889_p8 }
  0x54   :  { %p892_p11 = pnand %p891_p10, %p885_p7 }
  0x56   :  { %895 = shalt.err (!%p892_p11)
}
  0x57   :  { %83 = dma.hbm_to_vmem [thread:$0]  %s1257_s6, 1024, %s78_s18, [#allocation9], %s1002_s0, %s1002_s0, %s1003_s30  }
  0x58   :  { %s896_s29 = scalar_lea.hbm %s1259_s8, 1024 }
  0x59   :  { %p897_p12 = scmp.ne.s32.totalorder %s1259_s8, %s896_s29  ;;  %p900_p13 = scmp.lt.u32.totalorder %s896_s29, %s1259_s8 }
  0x5b   :  { %p902_p0 = pnand %p900_p13, %p897_p12 }
  0x5d   :  { %905 = shalt.err (!%p902_p0)
}
  0x5e   :  { %s906_s19 = scalar_lea.vmem %s1142_s20, 1024  ;;  %p911_p2 = scmp.lt.s32.totalorder %s1142_s20, %s1142_s20 }
  0x5f   :  { %p907_p1 = scmp.ne.s32.totalorder %s1142_s20, %s906_s19  ;;  %p912_p3 = scmp.lt.s32.totalorder %s906_s19, %s906_s19 }
  0x61   :  { %p913_p4 = por %p912_p3, %p911_p2 }
  0x63   :  { %p914_p5 = pnand %p913_p4, %p907_p1 }
  0x65   :  { %917 = shalt.err (!%p914_p5)
}
  0x66   :  { %97 = dma.hbm_to_vmem [thread:$0]  %s1259_s8, 1024, %s1142_s20, [#allocation12], %s1002_s0, %s1002_s0, %s1003_s30  }
  0x67   :  { %984 = dma.done.wait [#allocation3], 128  }
  0x68   :  { %985 = vsyncadd [#allocation3], 4294967168 }
  0x69   :  { %986 = dma.done.wait [#allocation6], 384  }
  0x6a   :  { %987 = vsyncadd [#allocation6], 4294966912 }
  0x6b   :  { %988 = dma.done.wait [#allocation9], 3072  }
  0x6c   :  { %989 = vsyncadd [#allocation9], 4294964224 }
  0x6d   :  { %990 = dma.done.wait [#allocation12], 1024  }
  0x6e   :  { %991 = vsyncadd [#allocation12], 4294966272  ;;  %v1006_v0 = vmov 0.0   ;;  %vm1007_vm0 = vmmov 0   ;;  %v742_v1 = vld [vmem:[#allocation7] sm:$0xff]   ;;  %v743_v2 = vld [vmem:[#allocation7 + $0x8] sm:$0xff]   ;;  %v208_v44 = vlaneseq }
  0x6f   :  { %678 = vmatprep.subr.bf16.mxu0 %v1006_v0  ;;  %682 = vmatprep.mubr.msk.bf16.mxu0 %vm1007_vm0, %v1006_v0  ;;  %v119_v3 = vld [vmem:[#allocation2] sm:$0xff]  ;;  %v747_v6 = vld [vmem:[#allocation8 + $0x14] ss:$8 sps:$4 sm:$0xff]   ;;  %vm144_vm1 = vcmask 261120   ;;  %v749_v8 = vld [vmem:[#allocation8 + $0x10] ss:$8 sps:$4 sm:$0xff]  }
  0x70   :  { %679 = vmatpush3.bf16.msra.mxu0 %v742_v1  ;;  %v744_v4 = vld [vmem:[#allocation8 + $0x4] ss:$8 sps:$4 sm:$0xff]   ;;  %v746_v5 = vld [vmem:[#allocation8] ss:$8 sps:$4 sm:$0xff]   ;;  %v120_v7 = vpack.c.bf16 %v119_v3, %v119_v3  ;;  %v753_v11 = vld [vmem:[#allocation8 + $0x34] ss:$8 sps:$4 sm:$0xff]  }
  0x71   :  { %680 = vmatprep.subr.bf16.mxu0 %v1006_v0  ;;  %298 = vmatprep.subr.bf16.mxu1 %v744_v4  ;;  %v750_v9 = vld [vmem:[#allocation8 + $0x24] ss:$8 sps:$4 sm:$0xff]   ;;  %v752_v10 = vld [vmem:[#allocation8 + $0x20] ss:$8 sps:$4 sm:$0xff]   ;;  %v755_v12 = vld [vmem:[#allocation8 + $0x30] ss:$8 sps:$4 sm:$0xff]  }
  0x72   :  { %299 = vmatpush1.bf16.msra.mxu1 %v746_v5  ;;  %v756_v13 = vld [vmem:[#allocation8 + $0x44] ss:$8 sps:$4 sm:$0xff]   ;;  %v758_v14 = vld [vmem:[#allocation8 + $0x40] ss:$8 sps:$4 sm:$0xff]   ;;  %v759_v15 = vld [vmem:[#allocation8 + $0x54] ss:$8 sps:$4 sm:$0xff]  }
  0x73   :  { %300 = vmatprep.subr.bf16.mxu1 %v747_v6  ;;  %v761_v16 = vld [vmem:[#allocation8 + $0x50] ss:$8 sps:$4 sm:$0xff]   ;;  %v762_v17 = vld [vmem:[#allocation8 + $0x64] ss:$8 sps:$4 sm:$0xff]   ;;  %v764_v18 = vld [vmem:[#allocation8 + $0x60] ss:$8 sps:$4 sm:$0xff]  }
  0x74   :  { %681 = vmatpush3.bf16.msra.mxu0 %v743_v2  ;;  %v765_v19 = vld [vmem:[#allocation8 + $0x74] ss:$8 sps:$4 sm:$0xff]   ;;  %v767_v20 = vld [vmem:[#allocation8 + $0x70] ss:$8 sps:$4 sm:$0xff]   ;;  %v1008_v21 = vmov 0   ;;  %v768_v22 = vld [vmem:[#allocation10] sm:$0xff]  }
  0x75   :  { %686 = vmatprep.subr.bf16.mxu0 %v1006_v0  ;;  %330 = vmatprep.mubr.bf16.mxu1 %v1008_v21  ;;  %v769_v23 = vld [vmem:[#allocation10 + $0x8] sm:$0xff]   ;;  %v619_v24 = vld [vmem:[%s1254_s3] ss:$0 sm:$0xff]  ;;  %v770_v32 = vld [vmem:[#allocation10 + $0x10] sm:$0xff]   ;;  %v209_v45 = vshrl.u32 %v208_v44, 7  ;;  %s1009_s21 = smov [#allocation14]  }
  0x76   :  { %301 = vmatpush1.bf16.msra.mxu1 %v749_v8  ;;  %v771_v33 = vld [vmem:[#allocation10 + $0x18] sm:$0xff]   ;;  %v772_v34 = vld [vmem:[#allocation10 + $0x20] sm:$0xff]   ;;  %v773_v35 = vld [vmem:[#allocation10 + $0x28] sm:$0xff]   ;;  %s590_s4 = sshll.u32 %s1009_s21, 4  ;;  %s591_s4 = int_to_ptr.vmem [resolvable:$true] %s590_s4 }
  0x77   :  { %683 = vmatmul.mubr.msk.bf16.vlgmr.msra.gmra.mrb[0].mxu0 %vm144_vm1, %v120_v7  ;;  %302 = vmatprep.subr.bf16.mxu1 %v750_v9  ;;  %v774_v36 = vld [vmem:[#allocation10 + $0x30] sm:$0xff]   ;;  %v775_v37 = vld [vmem:[#allocation10 + $0x38] sm:$0xff]   ;;  %v776_v38 = vld [vmem:[#allocation11] sm:$0xff]   ;;  %v210_v46 = vsub.s32 0, %v209_v45  ;;  %v214_v48 = vsub.s32 1, %v209_v45  ;;  %s918_s24 = scalar_lea.vmem %s591_s4, 128  ;;  %p923_p7 = scmp.lt.s32.totalorder %s591_s4, %s591_s4 }
  0x78   :  { %702 = vmatprep.mubr.msk.bf16.mxu0 %vm1007_vm0, %v1006_v0  ;;  %687 = vmatpush3.bf16.msra.mxu0 %v768_v22  ;;  %v777_v39 = vld [vmem:[#allocation11 + $0x8] sm:$0xff]   ;;  %v778_v40 = vld [vmem:[#allocation11 + $0x10] sm:$0xff]   ;;  %v779_v41 = vld [vmem:[#allocation11 + $0x18] sm:$0xff]   ;;  %p919_p6 = scmp.ne.s32.totalorder %s591_s4, %s918_s24  ;;  %p924_p8 = scmp.lt.s32.totalorder %s918_s24, %s918_s24 }
  0x79   :  { %688 = vmatprep.subr.bf16.mxu0 %v1006_v0  ;;  %v780_v42 = vld [vmem:[#allocation11 + $0x20] sm:$0xff]   ;;  %v781_v43 = vld [vmem:[#allocation11 + $0x28] sm:$0xff]   ;;  %v782_v1 = vld [vmem:[#allocation11 + $0x30] sm:$0xff]  }
  0x7a   :  { %303 = vmatpush1.bf16.msra.mxu1 %v752_v10  ;;  %v206_v47 = vld [vmem:[%s1256_s5] sm:$0x3]  ;;  %v342_v59 = vld [vmem:[#allocation5] sm:$0xff]  ;;  %v783_v2 = vld [vmem:[#allocation11 + $0x38] sm:$0xff]   ;;  %p925_p9 = por %p924_p8, %p923_p7 }
  0x7b   :  { %304 = vmatprep.subr.bf16.mxu1 %v753_v11  ;;  %v211_v49 = vrot.slane %v206_v47, %v210_v46  ;;  %v215_v50 = vrot.slane %v206_v47, %v214_v48  ;;  %v639_v3 = vld [vmem:[%s1258_s7] ss:$0 sm:$0xff] }
  0x7c   :  { %689 = vmatpush3.bf16.msra.mxu0 %v769_v23  ;;  %p926_p10 = pnand %p925_p9, %p919_p6 }
  0x7d   :  { %690 = vmatprep.subr.bf16.mxu0 %v1006_v0 }
  0x7e   :  { %305 = vmatpush1.bf16.msra.mxu1 %v755_v12 }
  0x7f   :  { %306 = vmatprep.subr.bf16.mxu1 %v756_v13 }
  0x80   :  { %691 = vmatpush3.bf16.msra.mxu0 %v770_v32 }
  0x81   :  { %692 = vmatprep.subr.bf16.mxu0 %v1006_v0 }
  0x82   :  { %307 = vmatpush1.bf16.msra.mxu1 %v758_v14 }
  0x83   :  { %308 = vmatprep.subr.bf16.mxu1 %v759_v15 }
  0x84   :  { %693 = vmatpush3.bf16.msra.mxu0 %v771_v33 }
  0x85   :  { %694 = vmatprep.subr.bf16.mxu0 %v1006_v0 }
  0x86   :  { %309 = vmatpush1.bf16.msra.mxu1 %v761_v16 }
  0x87   :  { %310 = vmatprep.subr.bf16.mxu1 %v762_v17 }
  0x88   :  { %695 = vmatpush3.bf16.msra.mxu0 %v772_v34 }
  0x89   :  { %696 = vmatprep.subr.bf16.mxu0 %v1006_v0 }
  0x8a   :  { %311 = vmatpush1.bf16.msra.mxu1 %v764_v18 }
  0x8b   :  { %312 = vmatprep.subr.bf16.mxu1 %v765_v19 }
  0x8c   :  { %697 = vmatpush3.bf16.msra.mxu0 %v773_v35 }
  0x8d   :  { %698 = vmatprep.subr.bf16.mxu0 %v1006_v0 }
  0x8e   :  { %313 = vmatpush1.bf16.msra.mxu1 %v767_v20 }
  0x8f   :  { %706 = vmatprep.subr.bf16.mxu1 %v1006_v0 }
  0x90   :  { %699 = vmatpush3.bf16.msra.mxu0 %v774_v36 }
  0x91   :  { %700 = vmatprep.subr.bf16.mxu0 %v1006_v0 }
  0x94   :  { %701 = vmatpush3.bf16.msra.mxu0 %v775_v37 }
 0x14a   :  { %v182_v25 = vpop.f32.mrb[0].mxu0 }
 0x14b   :  { %v183_v26 = vadd.f32 %v619_v24, %v182_v25  ;;  %v684_v27 = vpop.f32.mrb[1].mxu0 }
 0x14c   :  { %v185_v28 = vpop.f32.mrb[2].mxu0 }
 0x14d   :  { %v188_v29 = vmax.f32 %v183_v26, 0.0  ;;  %v685_v30 = vpop.f32.mrb[3].mxu0 }
 0x14f   :  { %v189_v31 = vpack.c.bf16 %v188_v29, %v188_v29 }
 0x151   :  { %331 = vmatmul.mubr.bf16.vlgmr.msra.gmra.mrb[0].mxu1 %v189_v31 }
 0x152   :  { %722 = vmatprep.mubr.msk.bf16.mxu1 %vm1007_vm0, %v1006_v0  ;;  %707 = vmatpush3.bf16.msra.mxu1 %v776_v38 }
 0x153   :  { %708 = vmatprep.subr.bf16.mxu1 %v1006_v0 }
 0x156   :  { %709 = vmatpush3.bf16.msra.mxu1 %v777_v39 }
 0x157   :  { %710 = vmatprep.subr.bf16.mxu1 %v1006_v0 }
 0x15a   :  { %711 = vmatpush3.bf16.msra.mxu1 %v778_v40 }
 0x15b   :  { %712 = vmatprep.subr.bf16.mxu1 %v1006_v0 }
 0x15e   :  { %713 = vmatpush3.bf16.msra.mxu1 %v779_v41 }
 0x15f   :  { %714 = vmatprep.subr.bf16.mxu1 %v1006_v0 }
 0x162   :  { %715 = vmatpush3.bf16.msra.mxu1 %v780_v42 }
 0x163   :  { %716 = vmatprep.subr.bf16.mxu1 %v1006_v0 }
 0x166   :  { %717 = vmatpush3.bf16.msra.mxu1 %v781_v43 }
 0x167   :  { %718 = vmatprep.subr.bf16.mxu1 %v1006_v0 }
 0x16a   :  { %719 = vmatpush3.bf16.msra.mxu1 %v782_v1 }
 0x16b   :  { %720 = vmatprep.subr.bf16.mxu1 %v1006_v0 }
 0x16e   :  { %721 = vmatpush3.bf16.msra.mxu1 %v783_v2 }
 0x224   :  { %v332_v51 = vpop.f32.mrb[0].mxu1 }
 0x225   :  { %v333_v52 = vadd.f32 %v332_v51, %v211_v49  ;;  %v334_v53 = vpop.f32.mrb[1].mxu1 }
 0x226   :  { %v335_v54 = vadd.f32 %v334_v53, %v215_v50  ;;  %v336_v55 = vpop.f32.mrb[2].mxu1 }
 0x227   :  { %572 = vst [vmem:[#allocation14] sm:$0xff] %v333_v52  ;;  %v337_v56 = vpop.f32.mrb[3].mxu1 }
 0x228   :  { %v339_v57 = vmul.f32 0.5, %v335_v54  ;;  %573 = vst [vmem:[#allocation16] sm:$0xff] %v335_v54 }
 0x22a   :  { %v340_v58 = vmul.f32 1.442695, %v339_v57 }
 0x22c   :  { %784 = vpow2.f32 %v340_v58 }
 0x236   :  { %v785_v60 = vpop.eup %784 }
 0x237   :  { %v343_v61 = vmul.f32 %v785_v60, %v342_v59 }
 0x239   :  { %v344_v62 = vadd.f32 %v343_v61, %v333_v52 }
 0x23b   :  { %v345_v63 = vpack.c.bf16 %v344_v62, %v344_v62 }
 0x23d   :  { %703 = vmatmul.mubr.bf16.vlgmr.msra.gmra.mrb[4].mxu0 %v345_v63 }
 0x310   :  { %v451_v4 = vpop.f32.mrb[4].mxu0 }
 0x311   :  { %v452_v5 = vadd.f32 %v639_v3, %v451_v4  ;;  %v704_v6 = vpop.f32.mrb[5].mxu0 }
 0x312   :  { %v454_v7 = vpop.f32.mrb[6].mxu0 }
 0x313   :  { %v457_v8 = vmax.f32 %v452_v5, 0.0  ;;  %v705_v9 = vpop.f32.mrb[7].mxu0 }
 0x315   :  { %v458_v10 = vpack.c.bf16 %v457_v8, %v457_v8 }
 0x317   :  { %723 = vmatmul.mubr.bf16.vlgmr.msra.gmra.mrb[4].mxu1 %v458_v10 }
 0x318   :  { %929 = shalt.err (!%p926_p10)
}
 0x319   :  { %s930_s25 = scalar_lea.hbm %s1262_s11, 128 }
 0x31a   :  { %p931_p11 = scmp.ne.s32.totalorder %s1262_s11, %s930_s25  ;;  %p934_p12 = scmp.lt.u32.totalorder %s930_s25, %s1262_s11 }
 0x31c   :  { %p936_p13 = pnand %p934_p12, %p931_p11 }
 0x31e   :  { %939 = shalt.err (!%p936_p13)
}
 0x31f   :  { %593 = dma.vmem_to_hbm [thread:$0]  %s591_s4, 128, %s1262_s11, [#allocation15]  }
 0x320   :  { %s1010_s28 = smov [#allocation16]  }
 0x321   :  { %s600_s29 = sshll.u32 %s1010_s28, 4  ;;  %s601_s29 = int_to_ptr.vmem [resolvable:$true] %s600_s29 }
 0x322   :  { %s940_s13 = scalar_lea.vmem %s601_s29, 128  ;;  %p945_p1 = scmp.lt.s32.totalorder %s601_s29, %s601_s29 }
 0x323   :  { %p941_p0 = scmp.ne.s32.totalorder %s601_s29, %s940_s13  ;;  %p946_p2 = scmp.lt.s32.totalorder %s940_s13, %s940_s13 }
 0x325   :  { %p947_p3 = por %p946_p2, %p945_p1 }
 0x327   :  { %p948_p4 = pnand %p947_p3, %p941_p0 }
 0x329   :  { %951 = shalt.err (!%p948_p4)
}
 0x32a   :  { %s952_s17 = scalar_lea.hbm %s1263_s12, 128 }
 0x32b   :  { %p953_p5 = scmp.ne.s32.totalorder %s1263_s12, %s952_s17  ;;  %p956_p6 = scmp.lt.u32.totalorder %s952_s17, %s1263_s12 }
 0x32d   :  { %p958_p7 = pnand %p956_p6, %p953_p5 }
 0x32f   :  { %961 = shalt.err (!%p958_p7)
}
 0x330   :  { %603 = dma.vmem_to_hbm [thread:$0]  %s601_s29, 128, %s1263_s12, [#allocation15]   ;;  %v648_v0 = vld [vmem:[%s1260_s9] ss:$0 sm:$0xff] }
 0x331   :  { %s1011_s5 = smov [#allocation13]  }
 0x332   :  { %s580_s20 = sshll.u32 %s1011_s5, 4  ;;  %s581_s20 = int_to_ptr.vmem [resolvable:$true] %s580_s20 }
 0x333   :  { %s962_s21 = scalar_lea.vmem %s581_s20, 64  ;;  %p967_p9 = scmp.lt.s32.totalorder %s581_s20, %s581_s20 }
 0x334   :  { %p963_p8 = scmp.ne.s32.totalorder %s581_s20, %s962_s21  ;;  %p968_p10 = scmp.lt.s32.totalorder %s962_s21, %s962_s21 }
 0x336   :  { %p969_p11 = por %p968_p10, %p967_p9 }
 0x338   :  { %p970_p12 = pnand %p969_p11, %p963_p8 }
 0x3ea   :  { %v564_v11 = vpop.f32.mrb[4].mxu1 }
 0x3eb   :  { %v565_v12 = vadd.f32 %v648_v0, %v564_v11  ;;  %v724_v13 = vpop.f32.mrb[5].mxu1 }
 0x3ec   :  { %v567_v14 = vpop.f32.mrb[6].mxu1 }
 0x3ed   :  { %v570_v15 = vpack.c.bf16 %v565_v12, %v565_v12  ;;  %v725_v16 = vpop.f32.mrb[7].mxu1 }
 0x3ef   :  { %571 = vst [vmem:[#allocation13] sm:$0xf] %v570_v15 }
 0x3f0   :  { %973 = shalt.err (!%p970_p12)
}
 0x3f1   :  { %s974_s9 = scalar_lea.hbm %s1261_s10, 64 }
 0x3f2   :  { %p975_p13 = scmp.ne.s32.totalorder %s1261_s10, %s974_s9  ;;  %p978_p0 = scmp.lt.u32.totalorder %s974_s9, %s1261_s10 }
 0x3f4   :  { %p980_p1 = pnand %p978_p0, %p975_p13 }
 0x3f6   :  { %983 = shalt.err (!%p980_p1)
}
 0x3f7   :  { %583 = dma.vmem_to_hbm [thread:$0]  %s581_s20, 64, %s1261_s10, [#allocation4]  }
 0x3f8   :  { %992 = dma.done.wait [#allocation4], 64  }
 0x3f9   :  { %993 = vsyncadd [#allocation4], 4294967232 }
 0x3fa   :  { %994 = dma.done.wait [#allocation15], 256  }
 0x3fb   :  { %995 = vsyncadd [#allocation15], 4294967040 }
 0x3fc   :  { %613 = vsyncpa [#allocation3], 1 }
 0x3fd   :  { %614 = vsyncpa [#allocation6], 1 }
 0x3fe   :  { %615 = vsyncpa [#allocation9], 1 }
 0x3ff   :  { %616 = vsyncpa [#allocation12], 1 }
 0x400   :  { %617 = vsyncpa [#allocation4], 1 }
 0x401   :  { %618 = vsyncpa [#allocation15], 1 }

</bundles_post_ra>
